<compile_context>
chip_gen: v7x
topology: tpu7x:2x2x1
jax: 0.10.0
libtpu: 0.0.40
codegen_flags: <defaults>
</compile_context>

<pallas_src>
import jax
import jax.numpy as jnp
from jax.experimental import pallas as pl
from jax.experimental.pallas import tpu as pltpu


def _resnet_layer_kernel(x_ref, w_ref, r_ref, bcast_ref, gamma_ref, beta_ref,
                         o_ref):
    # x_ref:     (N, H+2, (W+2)*Cin)   zero-padded NHWC input, W/Cin merged on lanes
    # w_ref:     (3*(W+2)*Cin, W*Cout) block-Toeplitz conv weight (3 vertical taps)
    # r_ref:     (W*Cout, Cout)        channel reduce matrix, carries 1/(N*H*W)
    # bcast_ref: (Cout, W*Cout)        channel broadcast matrix
    # gamma_ref: (1, W*Cout)           BN scale, tiled per (w, co)
    # beta_ref:  (1, W*Cout)           BN shift, tiled per (w, co)
    # o_ref:     (N*H, W*Cout)         lane-dense output slab
    n, hp, wc = x_ref.shape
    h = hp - 2
    m = n * h

    x = x_ref[...]

    # Conv as 3 accumulating MXU matmuls (one per vertical tap); the 3
    # horizontal taps are folded into the block-Toeplitz weight.  The weight
    # slices start at rows 0 / wc / 2*wc (all multiples of 8 -> aligned
    # sublane slices, no relayout).  No conv bias: it is cancelled exactly by
    # the training-mode batch mean.
    y = jnp.dot(x[:, 0:h, :].reshape(m, wc), w_ref[0:wc, :],
                preferred_element_type=jnp.float32)
    y = y + jnp.dot(x[:, 1:h + 1, :].reshape(m, wc), w_ref[wc:2 * wc, :],
                    preferred_element_type=jnp.float32)
    y = y + jnp.dot(x[:, 2:h + 2, :].reshape(m, wc), w_ref[2 * wc:3 * wc, :],
                    preferred_element_type=jnp.float32)

    # BatchNorm statistics on the MXU.  Two INDEPENDENT ones-LHS reductions
    # (sum and sum-of-squares) so the v5e/v6e MRF does not serialize a long
    # dependent matmul chain; the 8 identical rows keep everything at native
    # (8, 128) tile granularity.  The factored R (with the 1/count baked in)
    # and B reduce the W copies of each channel and re-broadcast the result
    # to the tiled (w, co) lane layout.
    ones8 = jnp.ones((8, m), dtype=jnp.float32)
    sum8 = jnp.dot(ones8, y, preferred_element_type=jnp.float32)       # (8, W*Cout)
    sq8 = jnp.dot(ones8, y * y, preferred_element_type=jnp.float32)    # (8, W*Cout)

    mean_c = jnp.dot(sum8, r_ref[...], preferred_element_type=jnp.float32)
    mean_t = jnp.dot(mean_c, bcast_ref[...],
                     preferred_element_type=jnp.float32)[0:1, :]       # (1, W*Cout)
    ey2_c = jnp.dot(sq8, r_ref[...], preferred_element_type=jnp.float32)
    ey2_t = jnp.dot(ey2_c, bcast_ref[...],
                    preferred_element_type=jnp.float32)[0:1, :]        # (1, W*Cout)
    var_t = ey2_t - mean_t * mean_t

    scale_t = jax.lax.rsqrt(var_t + 1e-5) * gamma_ref[...]
    # Normalize + affine + ReLU, single lane-dense (unmasked) store.
    o_ref[...] = jnp.maximum((y - mean_t) * scale_t + beta_ref[...], 0.0)


def precompute_params(w_oihw, b, gamma, beta, n, h, w):
    """Build all weight-derived kernel constants ONCE per weight update.

    `b` (the conv bias) is accepted for API parity with the module but is
    unused: under training-mode BatchNorm it is added and then exactly
    subtracted by the batch mean, so it never affects the output.
    """
    del b
    cout, cin, _, _ = w_oihw.shape
    wp2 = w + 2

    # Conv weight: OIHW -> block-Toeplitz (3*(W+2)*Cin, W*Cout).
    # w2[(dh, wp, ci), (w, co)] = weight[co, ci, dh, wp - w] if wp - w in {0,1,2}.
    w_hwio = jnp.transpose(w_oihw, (2, 3, 1, 0)).astype(jnp.float32)  # (dh,dw,ci,co)
    shift = (jnp.arange(wp2)[:, None, None]
             == jnp.arange(w)[None, :, None] + jnp.arange(3)[None, None, :])
    w2 = jnp.einsum('pwd,kdio->kpiwo', shift.astype(jnp.float32), w_hwio)
    w2 = w2.reshape(3 * wp2 * cin, w * cout)

    # Factored channel reduce (R, carries 1/count) and broadcast (B) matrices.
    col_ch = jnp.arange(w * cout) % cout
    ch = jnp.arange(cout)
    r = (col_ch[:, None] == ch[None, :]).astype(jnp.float32) / float(n * h * w)
    bcast = (ch[:, None] == col_ch[None, :]).astype(jnp.float32)

    # Per-(w, co) tiled BN affine row vectors (lane-dense).
    gamma_t = jnp.tile(gamma.astype(jnp.float32), (w,)).reshape(1, w * cout)
    beta_t = jnp.tile(beta.astype(jnp.float32), (w,)).reshape(1, w * cout)

    return w2, r, bcast, gamma_t, beta_t


@jax.jit
def resnet_layer_forward(x_nchw, w2, r, bcast, gamma_t, beta_t):
    """conv_first=True, batch_normalization=True, activation='relu'."""
    n, cin, h, w = x_nchw.shape
    cout = gamma_t.shape[1] // w

    # Input: NCHW -> padded NHWC with W and Cin merged onto the lane axis.
    x_nhwc = jnp.transpose(x_nchw, (0, 2, 3, 1)).astype(jnp.float32)
    x_pad = jnp.pad(x_nhwc, ((0, 0), (1, 1), (1, 1), (0, 0)))
    x2 = x_pad.reshape(n, h + 2, (w + 2) * cin)

    vmem = pl.BlockSpec(memory_space=pltpu.MemorySpace.VMEM)
    out2d = pl.pallas_call(
        _resnet_layer_kernel,
        out_shape=jax.ShapeDtypeStruct((n * h, w * cout), jnp.float32),
        in_specs=[vmem] * 6,
        out_specs=vmem,
    )(x2, w2, r, bcast, gamma_t, beta_t)

    # Lane-dense (N*H, W*Cout) -> NHWC -> NCHW.
    return jnp.transpose(out2d.reshape(n, h, w, cout), (0, 3, 1, 2))


def _reference_forward(x_nchw, w_oihw, b, gamma, beta):
    y = jax.lax.conv_general_dilated(
        x_nchw, w_oihw, window_strides=(1, 1), padding=((1, 1), (1, 1)),
        dimension_numbers=("NCHW", "OIHW", "NCHW"))
    y = y + b[None, :, None, None]
    mean = jnp.mean(y, axis=(0, 2, 3), keepdims=True)
    var = jnp.mean((y - mean) ** 2, axis=(0, 2, 3), keepdims=True)
    y = (y - mean) * jax.lax.rsqrt(var + 1e-5)
    y = y * gamma[None, :, None, None] + beta[None, :, None, None]
    return jnp.maximum(y, 0.0)


if __name__ == "__main__":
    # Small shapes consistent with the module: in_num_filters=4, num_filters=16.
    N, Cin, H, W = 2, 4, 16, 16
    Cout, K = 16, 3

    key = jax.random.PRNGKey(0)
    kx, kw, kb = jax.random.split(key, 3)

    x = jax.random.normal(kx, (N, Cin, H, W), dtype=jnp.float32)
    fan_in = Cin * K * K
    bound = 1.0 / (fan_in ** 0.5)
    w = jax.random.uniform(kw, (Cout, Cin, K, K), jnp.float32, -bound, bound)
    b = jax.random.uniform(kb, (Cout,), jnp.float32, -bound, bound)
    gamma = jnp.ones((Cout,), jnp.float32)   # BatchNorm2d default init
    beta = jnp.zeros((Cout,), jnp.float32)

    # Weight-derived constants built once (per weight update), outside the
    # per-call path.
    params = precompute_params(w, b, gamma, beta, N, H, W)
    params = jax.block_until_ready(params)

    out = resnet_layer_forward(x, *params)
    out = jax.block_until_ready(out)

    ref = _reference_forward(x, w, b, gamma, beta)
    assert out.shape == (N, Cout, H, W)
    assert jnp.allclose(out, ref, atol=1e-4, rtol=1e-4)

    print("KERNEL_OK")
</pallas_src>

<mosaic_0001>
module attributes {stable_mosaic.version = 11 : i64} {
  func.func @_resnet_layer_kernel(%arg0: memref<2x18x72xf32, #tpu.memory_space<vmem>>, %arg1: memref<216x256xf32, #tpu.memory_space<vmem>>, %arg2: memref<256x16xf32, #tpu.memory_space<vmem>>, %arg3: memref<16x256xf32, #tpu.memory_space<vmem>>, %arg4: memref<1x256xf32, #tpu.memory_space<vmem>>, %arg5: memref<1x256xf32, #tpu.memory_space<vmem>>, %arg6: memref<32x256xf32, #tpu.memory_space<vmem>>) attributes {dimension_semantics = [], scalar_prefetch = 0 : i64, scratch_operands = 0 : i64, tpu.core_type = #tpu.core_type<tc>} {
    %c0 = arith.constant 0 : index
    %c0_0 = arith.constant 0 : index
    %c0_1 = arith.constant 0 : index
    %0 = vector.load %arg0[%c0, %c0_0, %c0_1] : memref<2x18x72xf32, #tpu.memory_space<vmem>>, vector<2x18x72xf32>
    %1 = vector.extract_strided_slice %0 {offsets = [0, 0, 0], sizes = [2, 16, 72], strides = [1, 1, 1]} : vector<2x18x72xf32> to vector<2x16x72xf32>
    %2 = vector.shape_cast %1 : vector<2x16x72xf32> to vector<32x72xf32>
    %c0_2 = arith.constant 0 : index
    %c0_3 = arith.constant 0 : index
    %3 = vector.load %arg1[%c0_2, %c0_3] : memref<216x256xf32, #tpu.memory_space<vmem>>, vector<72x256xf32>
    %cst = arith.constant dense<0.000000e+00> : vector<32x256xf32>
    %4 = tpu.matmul %2, %3, %cst {dimension_numbers = #tpu.dot_dimension_numbers<[1], [0], [0], [1], [0, 0, 1, 1], [], []>} : vector<32x72xf32>, vector<72x256xf32>, vector<32x256xf32> -> vector<32x256xf32>
    %5 = vector.extract_strided_slice %0 {offsets = [0, 1, 0], sizes = [2, 16, 72], strides = [1, 1, 1]} : vector<2x18x72xf32> to vector<2x16x72xf32>
    %6 = vector.shape_cast %5 : vector<2x16x72xf32> to vector<32x72xf32>
    %c72 = arith.constant 72 : index
    %c0_4 = arith.constant 0 : index
    %7 = vector.load %arg1[%c72, %c0_4] : memref<216x256xf32, #tpu.memory_space<vmem>>, vector<72x256xf32>
    %cst_5 = arith.constant dense<0.000000e+00> : vector<32x256xf32>
    %8 = tpu.matmul %6, %7, %cst_5 {dimension_numbers = #tpu.dot_dimension_numbers<[1], [0], [0], [1], [0, 0, 1, 1], [], []>} : vector<32x72xf32>, vector<72x256xf32>, vector<32x256xf32> -> vector<32x256xf32>
    %9 = arith.addf %4, %8 : vector<32x256xf32>
    %10 = vector.extract_strided_slice %0 {offsets = [0, 2, 0], sizes = [2, 16, 72], strides = [1, 1, 1]} : vector<2x18x72xf32> to vector<2x16x72xf32>
    %11 = vector.shape_cast %10 : vector<2x16x72xf32> to vector<32x72xf32>
    %c144 = arith.constant 144 : index
    %c0_6 = arith.constant 0 : index
    %12 = vector.load %arg1[%c144, %c0_6] : memref<216x256xf32, #tpu.memory_space<vmem>>, vector<72x256xf32>
    %cst_7 = arith.constant dense<0.000000e+00> : vector<32x256xf32>
    %13 = tpu.matmul %11, %12, %cst_7 {dimension_numbers = #tpu.dot_dimension_numbers<[1], [0], [0], [1], [0, 0, 1, 1], [], []>} : vector<32x72xf32>, vector<72x256xf32>, vector<32x256xf32> -> vector<32x256xf32>
    %14 = arith.addf %9, %13 : vector<32x256xf32>
    %cst_8 = arith.constant 1.000000e+00 : f32
    %15 = vector.broadcast %cst_8 : f32 to vector<8x32xf32>
    %cst_9 = arith.constant dense<0.000000e+00> : vector<8x256xf32>
    %16 = tpu.matmul %15, %14, %cst_9 {dimension_numbers = #tpu.dot_dimension_numbers<[1], [0], [0], [1], [0, 0, 1, 1], [], []>} : vector<8x32xf32>, vector<32x256xf32>, vector<8x256xf32> -> vector<8x256xf32>
    %17 = arith.mulf %14, %14 : vector<32x256xf32>
    %cst_10 = arith.constant dense<0.000000e+00> : vector<8x256xf32>
    %18 = tpu.matmul %15, %17, %cst_10 {dimension_numbers = #tpu.dot_dimension_numbers<[1], [0], [0], [1], [0, 0, 1, 1], [], []>} : vector<8x32xf32>, vector<32x256xf32>, vector<8x256xf32> -> vector<8x256xf32>
    %c0_11 = arith.constant 0 : index
    %c0_12 = arith.constant 0 : index
    %19 = vector.load %arg2[%c0_11, %c0_12] : memref<256x16xf32, #tpu.memory_space<vmem>>, vector<256x16xf32>
    %cst_13 = arith.constant dense<0.000000e+00> : vector<8x16xf32>
    %20 = tpu.matmul %16, %19, %cst_13 {dimension_numbers = #tpu.dot_dimension_numbers<[1], [0], [0], [1], [0, 0, 1, 1], [], []>} : vector<8x256xf32>, vector<256x16xf32>, vector<8x16xf32> -> vector<8x16xf32>
    %c0_14 = arith.constant 0 : index
    %c0_15 = arith.constant 0 : index
    %21 = vector.load %arg3[%c0_14, %c0_15] : memref<16x256xf32, #tpu.memory_space<vmem>>, vector<16x256xf32>
    %cst_16 = arith.constant dense<0.000000e+00> : vector<8x256xf32>
    %22 = tpu.matmul %20, %21, %cst_16 {dimension_numbers = #tpu.dot_dimension_numbers<[1], [0], [0], [1], [0, 0, 1, 1], [], []>} : vector<8x16xf32>, vector<16x256xf32>, vector<8x256xf32> -> vector<8x256xf32>
    %23 = vector.extract_strided_slice %22 {offsets = [0, 0], sizes = [1, 256], strides = [1, 1]} : vector<8x256xf32> to vector<1x256xf32>
    %c0_17 = arith.constant 0 : index
    %c0_18 = arith.constant 0 : index
    %24 = vector.load %arg2[%c0_17, %c0_18] : memref<256x16xf32, #tpu.memory_space<vmem>>, vector<256x16xf32>
    %cst_19 = arith.constant dense<0.000000e+00> : vector<8x16xf32>
    %25 = tpu.matmul %18, %24, %cst_19 {dimension_numbers = #tpu.dot_dimension_numbers<[1], [0], [0], [1], [0, 0, 1, 1], [], []>} : vector<8x256xf32>, vector<256x16xf32>, vector<8x16xf32> -> vector<8x16xf32>
    %c0_20 = arith.constant 0 : index
    %c0_21 = arith.constant 0 : index
    %26 = vector.load %arg3[%c0_20, %c0_21] : memref<16x256xf32, #tpu.memory_space<vmem>>, vector<16x256xf32>
    %cst_22 = arith.constant dense<0.000000e+00> : vector<8x256xf32>
    %27 = tpu.matmul %25, %26, %cst_22 {dimension_numbers = #tpu.dot_dimension_numbers<[1], [0], [0], [1], [0, 0, 1, 1], [], []>} : vector<8x16xf32>, vector<16x256xf32>, vector<8x256xf32> -> vector<8x256xf32>
    %28 = vector.extract_strided_slice %27 {offsets = [0, 0], sizes = [1, 256], strides = [1, 1]} : vector<8x256xf32> to vector<1x256xf32>
    %29 = arith.mulf %23, %23 : vector<1x256xf32>
    %30 = arith.subf %28, %29 : vector<1x256xf32>
    %cst_23 = arith.constant 9.99999974E-6 : f32
    %31 = vector.broadcast %cst_23 : f32 to vector<1x256xf32>
    %32 = arith.addf %30, %31 : vector<1x256xf32>
    %33 = math.rsqrt %32 : vector<1x256xf32>
    %c0_24 = arith.constant 0 : index
    %c0_25 = arith.constant 0 : index
    %34 = vector.load %arg4[%c0_24, %c0_25] : memref<1x256xf32, #tpu.memory_space<vmem>>, vector<1x256xf32>
    %35 = arith.mulf %33, %34 : vector<1x256xf32>
    %36 = vector.broadcast %23 : vector<1x256xf32> to vector<32x256xf32>
    %37 = arith.subf %14, %36 : vector<32x256xf32>
    %38 = vector.broadcast %35 : vector<1x256xf32> to vector<32x256xf32>
    %39 = arith.mulf %37, %38 : vector<32x256xf32>
    %c0_26 = arith.constant 0 : index
    %c0_27 = arith.constant 0 : index
    %40 = vector.load %arg5[%c0_26, %c0_27] : memref<1x256xf32, #tpu.memory_space<vmem>>, vector<1x256xf32>
    %41 = vector.broadcast %40 : vector<1x256xf32> to vector<32x256xf32>
    %42 = arith.addf %39, %41 : vector<32x256xf32>
    %cst_28 = arith.constant 0.000000e+00 : f32
    %43 = vector.broadcast %cst_28 : f32 to vector<32x256xf32>
    %44 = arith.maximumf %42, %43 : vector<32x256xf32>
    %c0_29 = arith.constant 0 : index
    %c0_30 = arith.constant 0 : index
    %45 = vector.load %arg6[%c0_29, %c0_30] : memref<32x256xf32, #tpu.memory_space<vmem>>, vector<32x256xf32>
    tpu.vector_store %arg6[%c0_29, %c0_30], %44 {strides = array<i32>} : memref<32x256xf32, #tpu.memory_space<vmem>>, vector<32x256xf32>,
    return
  }
}

</mosaic_0001>

<bundles_post_ra>
// kernel: resnet_layer_forward.1
= control target key start
LH: loop header
LB: loop body
LE: loop exit
PB: predicated region body
PF: predicated region fallthrough
CT: control target
= control target key end

     0   :  { %v1228_v3 = vmov 0.0   ;;  %vm53_vm0 = vcmask 1046528   ;;  %vm82_vm1 = vcmask 588800   ;;  %vm277_vm2 = vcmask 1045504   ;;  %s1729_s1 = inlined_call_operand.vmem [shape: f32[216,256], index: 1, kind: input, shape index: {}]   ;;  %s1730_s0 = inlined_call_operand.vmem [shape: f32[2,18,72], index: 0, kind: input, shape index: {}]   ;;  %s1731_s2 = inlined_call_operand.vmem [shape: f32[256,16], index: 2, kind: input, shape index: {}]   ;;  %s1732_s3 = inlined_call_operand.vmem [shape: f32[16,256], index: 3, kind: input, shape index: {}]   ;;  %s1733_s4 = inlined_call_operand.vmem [shape: f32[1,256], index: 4, kind: input, shape index: {}]   ;;  %s1734_s5 = inlined_call_operand.vmem [shape: f32[1,256], index: 5, kind: input, shape index: {}]   ;;  %s1735_s6 = inlined_call_operand.vmem [shape: f32[32,256], index: 6, kind: output, shape index: {}]  }
   0x1   :  { %v65_v0 = vld [vmem:[%s1729_s1 + $0x98] sm:$0xff]  ;;  %v67_v1 = vld [vmem:[%s1729_s1 + $0xa8] sm:$0xff]  ;;  %v64_v2 = vld [vmem:[%s1729_s1 + $0x90] sm:$0xff]  ;;  %155 = vmatprep.mubr.f32.mxu0 %v1228_v3  ;;  %558 = vmatprep.mubr.f32.mxu1 %v1228_v3  ;;  %vm411_vm3 = vcmask 261120   ;;  %vm671_vm4 = vcmask 130048  }
   0x2   :  { %v1070_v4 = vpack.c.bf16 %v67_v1, %v65_v0  ;;  %v66_v5 = vld [vmem:[%s1729_s1 + $0xa0] sm:$0xff]  ;;  %v69_v6 = vld [vmem:[%s1729_s1 + $0xb8] sm:$0xff]  ;;  %v71_v7 = vld [vmem:[%s1729_s1 + $0xc8] sm:$0xff] }
   0x3   :  { %v1072_v8 = vpack.c.bf16 %v66_v5, %v64_v2  ;;  %v1074_v9 = vpack.c.bf16 %v71_v7, %v69_v6  ;;  %v68_v10 = vld [vmem:[%s1729_s1 + $0xb0] sm:$0xff]  ;;  %v70_v11 = vld [vmem:[%s1729_s1 + $0xc0] sm:$0xff]  ;;  %v73_v12 = vld [vmem:[%s1729_s1 + $0xd8] sm:$0xff] }
   0x4   :  { %1071 = vmatprep.subr.bf16.mxu0 %v1070_v4  ;;  %v75_v13 = vld [vmem:[%s1729_s1 + $0xe8] sm:$0xff]  ;;  %v1076_v14 = vpack.c.bf16 %v70_v11, %v68_v10  ;;  %v72_v16 = vld [vmem:[%s1729_s1 + $0xd0] sm:$0xff]  ;;  %v74_v17 = vld [vmem:[%s1729_s1 + $0xe0] sm:$0xff] }
   0x5   :  { %1073 = vmatpush1.bf16.msra.mxu0 %v1072_v8  ;;  %v1078_v15 = vpack.c.bf16 %v75_v13, %v73_v12  ;;  %v77_v18 = vld [vmem:[%s1729_s1 + $0xf8] sm:$0xff]  ;;  %v79_v19 = vld [vmem:[%s1729_s1 + $0x108] sm:$0xff]  ;;  %v1080_v20 = vpack.c.bf16 %v74_v17, %v72_v16  ;;  %v76_v22 = vld [vmem:[%s1729_s1 + $0xf0] sm:$0xff] }
   0x6   :  { %1075 = vmatprep.subr.bf16.mxu0 %v1074_v9  ;;  %v1082_v21 = vpack.c.bf16 %v79_v19, %v77_v18  ;;  %v78_v23 = vld [vmem:[%s1729_s1 + $0x100] sm:$0xff]  ;;  %v1323_v25 = vld [vmem:[%s1730_s0 + $0x8] sm:$0xff]  ;;  %v81_v27 = vld [vmem:[%s1729_s1 + $0x118] sm:$0xff] }
   0x7   :  { %v1318_v24 = vld [vmem:[%s1730_s0] sm:$0xff]  ;;  %v1084_v26 = vpack.c.bf16 %v78_v23, %v76_v22  ;;  %v30_v28 = vld [vmem:[%s1729_s1 + $0x8] sm:$0xff]  ;;  %v32_v29 = vld [vmem:[%s1729_s1 + $0x18] sm:$0xff]  ;;  %v55_v31 = vrot.slane %v1323_v25, 1 }
   0x8   :  { %v54_v30 = vrot.slane %v1318_v24, 1  ;;  %v29_v32 = vld [vmem:[%s1729_s1] sm:$0xff]  ;;  %v31_v33 = vld [vmem:[%s1729_s1 + $0x10] sm:$0xff]  ;;  %v34_v35 = vld [vmem:[%s1729_s1 + $0x28] sm:$0xff]  ;;  %v1086_v38 = vpack.c.bf16 %v32_v29, %v30_v28 }
   0x9   :  { %1077 = vmatpush1.bf16.msra.mxu0 %v1076_v14  ;;  %v1345_v34 = vld [vmem:[%s1730_s0 + $0x10] sm:$0x3]  ;;  %v36_v36 = vld [vmem:[%s1729_s1 + $0x38] sm:$0xff]  ;;  %v1088_v40 = vpack.c.bf16 %v31_v33, %v29_v32  ;;  %v33_v41 = vld [vmem:[%s1729_s1 + $0x20] sm:$0xff]  ;;  %v278_v32 = vrot.slane %v1318_v24, 2  ;;  %v279_v33 = vrot.slane %v1323_v25, 2 }
   0xa   :  { %1079 = vmatprep.subr.bf16.mxu0 %v1078_v15  ;;  %v80_v37 = vld [vmem:[%s1729_s1 + $0x110] sm:$0xff]  ;;  %v56_v39 = vsel %vm53_vm0, %v54_v30, %v55_v31  ;;  %v57_v42 = vrot.slane %v1345_v34, 1  ;;  %v1090_v43 = vpack.c.bf16 %v36_v36, %v34_v35  ;;  %v1367_v45 = vld [vmem:[%s1730_s0 + $0x18] sm:$0xff]  ;;  %v1372_v46 = vld [vmem:[%s1730_s0 + $0x20] sm:$0xff] }
   0xb   :  { %v35_v44 = vld [vmem:[%s1729_s1 + $0x30] sm:$0xff]  ;;  %v38_v47 = vld [vmem:[%s1729_s1 + $0x48] sm:$0xff]  ;;  %v40_v48 = vld [vmem:[%s1729_s1 + $0x58] sm:$0xff]  ;;  %v59_v51 = vrot.slane %v1367_v45, 1  ;;  %v60_v52 = vrot.slane %v1372_v46, 1 }
   0xc   :  { %v1092_v49 = vpack.c.bf16 %v35_v44, %v33_v41  ;;  %v58_v50 = vsel %vm53_vm0, %v55_v31, %v57_v42  ;;  %v1094_v53 = vpack.c.bf16 %v40_v48, %v38_v47  ;;  %v37_v54 = vld [vmem:[%s1729_s1 + $0x40] sm:$0xff]  ;;  %v39_v55 = vld [vmem:[%s1729_s1 + $0x50] sm:$0xff]  ;;  %v1394_v56 = vld [vmem:[%s1730_s0 + $0x28] sm:$0x3] }
   0xd   :  { %1081 = vmatpush1.bf16.msra.mxu0 %v1080_v20  ;;  %v42_v57 = vld [vmem:[%s1729_s1 + $0x68] sm:$0xff]  ;;  %v44_v58 = vld [vmem:[%s1729_s1 + $0x78] sm:$0xff]  ;;  %v1096_v59 = vpack.c.bf16 %v39_v55, %v37_v54  ;;  %v61_v60 = vsel %vm53_vm0, %v59_v51, %v60_v52  ;;  %v62_v61 = vrot.slane %v1394_v56, 1  ;;  %v41_v63 = vld [vmem:[%s1729_s1 + $0x60] sm:$0xff]  ;;  %v286_v41 = vrot.slane %v1394_v56, 2 }
   0xe   :  { %1083 = vmatprep.subr.bf16.mxu0 %v1082_v21  ;;  %v1098_v62 = vpack.c.bf16 %v44_v58, %v42_v57  ;;  %v43_v0 = vld [vmem:[%s1729_s1 + $0x70] sm:$0xff]  ;;  %v46_v4 = vld [vmem:[%s1729_s1 + $0x88] sm:$0xff]  ;;  %v291_v6 = vld [vmem:[%s1729_s1 + $0x138] sm:$0xff] }
   0xf   :  { %v1100_v1 = vpack.c.bf16 %v43_v0, %v41_v63  ;;  %v63_v2 = vsel %vm53_vm0, %v60_v52, %v62_v61  ;;  %v289_v5 = vld [vmem:[%s1729_s1 + $0x128] sm:$0xff]  ;;  %v288_v7 = vld [vmem:[%s1729_s1 + $0x120] sm:$0xff]  ;;  %v290_v8 = vld [vmem:[%s1729_s1 + $0x130] sm:$0xff] }
  0x10   :  { %v293_v9 = vld [vmem:[%s1729_s1 + $0x148] sm:$0xff]  ;;  %v295_v10 = vld [vmem:[%s1729_s1 + $0x158] sm:$0xff]  ;;  %v45_v11 = vld [vmem:[%s1729_s1 + $0x80] sm:$0xff]  ;;  %v1102_v12 = vpack.c.bf16 %v291_v6, %v289_v5  ;;  %v1104_v13 = vpack.c.bf16 %v290_v8, %v288_v7 }
  0x11   :  { %1085 = vmatpush1.bf16.msra.mxu0 %v1084_v26  ;;  %v1106_v14 = vpack.c.bf16 %v295_v10, %v293_v9  ;;  %v292_v15 = vld [vmem:[%s1729_s1 + $0x140] sm:$0xff]  ;;  %v294_v16 = vld [vmem:[%s1729_s1 + $0x150] sm:$0xff]  ;;  %v297_v17 = vld [vmem:[%s1729_s1 + $0x168] sm:$0xff] }
  0x12   :  { %107 = vmatprep.subr.mxu0 %v81_v27  ;;  %v299_v18 = vld [vmem:[%s1729_s1 + $0x178] sm:$0xff]  ;;  %v1108_v19 = vpack.c.bf16 %v294_v16, %v292_v15  ;;  %v296_v21 = vld [vmem:[%s1729_s1 + $0x160] sm:$0xff]  ;;  %v298_v22 = vld [vmem:[%s1729_s1 + $0x170] sm:$0xff] }
  0x13   :  { %v1110_v20 = vpack.c.bf16 %v299_v18, %v297_v17  ;;  %v301_v23 = vld [vmem:[%s1729_s1 + $0x188] sm:$0xff]  ;;  %v303_v26 = vld [vmem:[%s1729_s1 + $0x198] sm:$0xff]  ;;  %v1112_v27 = vpack.c.bf16 %v298_v22, %v296_v21  ;;  %v300_v29 = vld [vmem:[%s1729_s1 + $0x180] sm:$0xff] }
  0x14   :  { %v1114_v28 = vpack.c.bf16 %v303_v26, %v301_v23  ;;  %v302_v30 = vld [vmem:[%s1729_s1 + $0x190] sm:$0xff]  ;;  %v305_v35 = vld [vmem:[%s1729_s1 + $0x1a8] sm:$0xff]  ;;  %v304_v36 = vld [vmem:[%s1729_s1 + $0x1a0] sm:$0xff] }
  0x15   :  { %108 = vmatpush1.msra.mxu0 %v80_v37  ;;  %v1116_v31 = vpack.c.bf16 %v302_v30, %v300_v29  ;;  %v581_v61 = vld [vmem:[%s1731_s2 + $0x80] sm:$0xff]  ;;  %v566_v7 = vld [vmem:[%s1731_s2 + $0x8] sm:$0xff]  ;;  %v583_v8 = vld [vmem:[%s1731_s2 + $0x90] sm:$0xff] }
  0x16   :  { %1087 = vmatprep.subr.bf16.mxu0 %v1086_v38  ;;  %984 = vmatmul.mubr.msk.f32.vlgmr.msra.gmra.mrb[0].mxu0 %vm82_vm1, %v56_v39  ;;  %v283_v38 = vrot.slane %v1367_v45, 2  ;;  %v284_v39 = vrot.slane %v1372_v46, 2  ;;  %v565_v6 = vld [vmem:[%s1731_s2] sm:$0xff]  ;;  %v584_v9 = vld [vmem:[%s1731_s2 + $0x98] sm:$0xff]  ;;  %v586_v16 = vld [vmem:[%s1731_s2 + $0xa8] sm:$0xff] }
  0x17   :  { %1089 = vmatpush1.bf16.msra.mxu0 %v1088_v40  ;;  %161 = vmatprep.mubr.f32.mxu0 %v1228_v3  ;;  %v1567_v10 = vpack.c.bf16 %v566_v7, %v565_v6  ;;  %v585_v15 = vld [vmem:[%s1731_s2 + $0xa0] sm:$0xff]  ;;  %v587_v21 = vld [vmem:[%s1731_s2 + $0xb0] sm:$0xff]  ;;  %v588_v22 = vld [vmem:[%s1731_s2 + $0xb8] sm:$0xff] }
  0x18   :  { %1091 = vmatprep.subr.bf16.mxu0 %v1090_v43  ;;  %v285_v40 = vsel %vm277_vm2, %v283_v38, %v284_v39  ;;  %v1589_v18 = vpack.c.bf16 %v586_v16, %v585_v15  ;;  %v1607_v26 = vpack.c.bf16 %v588_v22, %v587_v21  ;;  %v589_v29 = vld [vmem:[%s1731_s2 + $0xc0] sm:$0xff]  ;;  %v590_v30 = vld [vmem:[%s1731_s2 + $0xc8] sm:$0xff]  ;;  %v575_v38 = vld [vmem:[%s1731_s2 + $0x50] sm:$0xff] }
  0x19   :  { %v669_v6 = vld [vmem:[%s1732_s3 + $0x10] sm:$0xff] }
  0x1a   :  { %985 = vmatmul.mubr.msk.f32.gmra.mrb[2].mxu0 %vm82_vm1, %v58_v50 }
  0x1b   :  { %1093 = vmatpush1.bf16.msra.mxu0 %v1092_v49  ;;  %167 = vmatprep.mubr.f32.mxu0 %v1228_v3 }
  0x1c   :  { %1095 = vmatprep.subr.bf16.mxu0 %v1094_v53 }
  0x1e   :  { %986 = vmatmul.mubr.msk.f32.gmra.mrb[4].mxu0 %vm82_vm1, %v61_v60 }
  0x1f   :  { %1097 = vmatpush1.bf16.msra.mxu0 %v1096_v59  ;;  %173 = vmatprep.mubr.f32.mxu0 %v1228_v3 }
  0x20   :  { %1099 = vmatprep.subr.bf16.mxu0 %v1098_v62  ;;  %v582_v62 = vld [vmem:[%s1731_s2 + $0x88] sm:$0xff] }
  0x21   :  { %v1553_v5 = vpack.c.bf16 %v582_v62, %v581_v61  ;;  %v670_v61 = vld [vmem:[%s1732_s3 + $0x18] sm:$0xff] }
  0x22   :  { %987 = vmatmul.mubr.msk.f32.gmra.mrb[6].mxu0 %vm82_vm1, %v63_v2 }
  0x23   :  { %1101 = vmatpush1.bf16.msra.mxu0 %v1100_v1  ;;  %252 = vmatprep.mubr.f32.mxu0 %v1228_v3 }
  0x24   :  { %204 = vmatprep.subr.mxu0 %v46_v4 }
  0x27   :  { %205 = vmatpush1.msra.mxu0 %v45_v11  ;;  %v1229_v11 = vmov 1.0  }
  0x28   :  { %1103 = vmatprep.subr.bf16.mxu0 %v1102_v12  ;;  %988 = vmatmul.mubr.msk.f32.vlgmr.msra.gmra.mrb[0].mxu0 %vm82_vm1, %v1318_v24  ;;  %v280_v24 = vsel %vm277_vm2, %v278_v32, %v279_v33  ;;  %v1570_v12 = vpack.c.bf16 %v584_v9, %v583_v8  ;;  %v1150_v32 = vpack.c.bf16 %v590_v30, %v589_v29 }
  0x29   :  { %1105 = vmatpush1.bf16.msra.mxu0 %v1104_v13  ;;  %258 = vmatprep.mubr.f32.mxu0 %v1228_v3  ;;  %v567_v13 = vld [vmem:[%s1731_s2 + $0x10] sm:$0xff] }
  0x2a   :  { %1107 = vmatprep.subr.bf16.mxu0 %v1106_v14  ;;  %v568_v14 = vld [vmem:[%s1731_s2 + $0x18] sm:$0xff] }
  0x2b   :  { %v1586_v17 = vpack.c.bf16 %v568_v14, %v567_v13 }
  0x2c   :  { %989 = vmatmul.mubr.msk.f32.gmra.mrb[2].mxu0 %vm82_vm1, %v1323_v25  ;;  %v281_v25 = vrot.slane %v1345_v34, 2  ;;  %v287_v34 = vsel %vm277_vm2, %v284_v39, %v286_v41  ;;  %v576_v39 = vld [vmem:[%s1731_s2 + $0x58] sm:$0xff]  ;;  %v594_v41 = vld [vmem:[%s1731_s2 + $0xe8] sm:$0xff] }
  0x2d   :  { %1109 = vmatpush1.bf16.msra.mxu0 %v1108_v19  ;;  %264 = vmatprep.mubr.f32.mxu0 %v1228_v3  ;;  %v569_v19 = vld [vmem:[%s1731_s2 + $0x20] sm:$0xff] }
  0x2e   :  { %1111 = vmatprep.subr.bf16.mxu0 %v1110_v20  ;;  %v282_v37 = vsel %vm277_vm2, %v279_v33, %v281_v25  ;;  %v570_v20 = vld [vmem:[%s1731_s2 + $0x28] sm:$0xff]  ;;  %v573_v33 = vld [vmem:[%s1731_s2 + $0x40] sm:$0xff] }
  0x2f   :  { %v1604_v23 = vpack.c.bf16 %v570_v20, %v569_v19 }
  0x30   :  { %990 = vmatmul.mubr.msk.f32.gmra.mrb[4].mxu0 %vm82_vm1, %v1367_v45 }
  0x31   :  { %1113 = vmatpush1.bf16.msra.mxu0 %v1112_v27  ;;  %270 = vmatprep.mubr.f32.mxu0 %v1228_v3  ;;  %v571_v27 = vld [vmem:[%s1731_s2 + $0x30] sm:$0xff] }
  0x32   :  { %1115 = vmatprep.subr.bf16.mxu0 %v1114_v28  ;;  %v572_v28 = vld [vmem:[%s1731_s2 + $0x38] sm:$0xff] }
  0x34   :  { %991 = vmatmul.mubr.msk.f32.gmra.mrb[6].mxu0 %vm82_vm1, %v1372_v46 }
  0x35   :  { %1117 = vmatpush1.bf16.msra.mxu0 %v1116_v31  ;;  %378 = vmatprep.mubr.f32.mxu0 %v1228_v3  ;;  %v1622_v31 = vpack.c.bf16 %v572_v28, %v571_v27 }
  0x36   :  { %330 = vmatprep.subr.mxu0 %v305_v35  ;;  %v574_v35 = vld [vmem:[%s1731_s2 + $0x48] sm:$0xff] }
  0x37   :  { %v1152_v25 = vpack.c.bf16 %v574_v35, %v573_v33  ;;  %v944_v35 = vld [vmem:[%s1734_s5] sm:$0x3] }
  0x39   :  { %331 = vmatpush1.msra.mxu0 %v304_v36  ;;  %v591_v36 = vld [vmem:[%s1731_s2 + $0xd0] sm:$0xff] }
  0x3a   :  { %992 = vmatmul.mubr.msk.f32.vlgmr.msra.gmra.mrb[0].mxu0 %vm82_vm1, %v280_v24  ;;  %v592_v24 = vld [vmem:[%s1731_s2 + $0xd8] sm:$0xff] }
  0x3b   :  { %384 = vmatprep.mubr.f32.mxu0 %v1228_v3 }
  0x3e   :  { %993 = vmatmul.mubr.msk.f32.gmra.mrb[2].mxu0 %vm82_vm1, %v282_v37  ;;  %v1154_v37 = vpack.c.bf16 %v592_v24, %v591_v36 }
  0x3f   :  { %390 = vmatprep.mubr.f32.mxu0 %v1228_v3 }
  0x42   :  { %994 = vmatmul.mubr.msk.f32.gmra.mrb[4].mxu0 %vm82_vm1, %v285_v40  ;;  %v593_v40 = vld [vmem:[%s1731_s2 + $0xe0] sm:$0xff] }
  0x43   :  { %396 = vmatprep.mubr.f32.mxu0 %v1228_v3 }
  0x46   :  { %995 = vmatmul.mubr.msk.f32.gmra.mrb[6].mxu0 %vm82_vm1, %v287_v34  ;;  %v1156_v34 = vpack.c.bf16 %v576_v39, %v575_v38 }
  0x47   :  { %479 = vmatprep.mubr.f32.mxu0 %v1228_v3 }
 0x10d   :  { %v1507_v42 = vpop.f32.mrb[0].mxu0 }
 0x10e   :  { %v1509_v43 = vpop.f32.mrb[1].mxu0  ;;  %v486_v47 = vmul.f32 %v1507_v42, %v1507_v42 }
 0x10f   :  { %v487_v50 = vmul.f32 %v1509_v43, %v1509_v43 }
 0x111   :  { %v1511_v44 = vpop.f32.mrb[2].mxu0 }
 0x112   :  { %v1120_v45 = vpack.c.bf16 %v1511_v44, %v1507_v42  ;;  %v1515_v46 = vpop.f32.mrb[3].mxu0  ;;  %v488_v48 = vmul.f32 %v1511_v44, %v1511_v44 }
 0x113   :  { %v1118_v49 = vpack.c.bf16 %v1515_v46, %v1509_v43  ;;  %v489_v51 = vmul.f32 %v1515_v46, %v1515_v46 }
 0x114   :  { %v1128_v52 = vpack.c.bf16 %v488_v48, %v486_v47  ;;  %v577_v47 = vld [vmem:[%s1731_s2 + $0x60] sm:$0xff]  ;;  %v578_v48 = vld [vmem:[%s1731_s2 + $0x68] sm:$0xff] }
 0x115   :  { %v1527_v53 = vpop.f32.mrb[4].mxu0  ;;  %1119 = vmatprep.subr.bf16.mxu0 %v1118_v49  ;;  %v1126_v54 = vpack.c.bf16 %v489_v51, %v487_v50  ;;  %v595_v49 = vld [vmem:[%s1731_s2 + $0xf0] sm:$0xff]  ;;  %v596_v50 = vld [vmem:[%s1731_s2 + $0xf8] sm:$0xff]  ;;  %v1160_v51 = vpack.c.bf16 %v578_v48, %v577_v47 }
 0x116   :  { %v1529_v55 = vpop.f32.mrb[5].mxu0  ;;  %1121 = vmatpush1.bf16.msra.mxu0 %v1120_v45  ;;  %v490_v57 = vmul.f32 %v1527_v53, %v1527_v53  ;;  %v1158_v45 = vpack.c.bf16 %v594_v41, %v593_v40 }
 0x117   :  { %1127 = vmatprep.subr.bf16.mxu1 %v1126_v54  ;;  %v491_v63 = vmul.f32 %v1529_v55, %v1529_v55  ;;  %v579_v54 = vld [vmem:[%s1731_s2 + $0x70] sm:$0xff] }
 0x118   :  { %1129 = vmatpush1.bf16.msra.mxu1 %v1128_v52  ;;  %v1162_v52 = vpack.c.bf16 %v596_v50, %v595_v49 }
 0x119   :  { %v1531_v56 = vpop.f32.mrb[6].mxu0 }
 0x11a   :  { %v1124_v58 = vpack.c.bf16 %v1531_v56, %v1527_v53  ;;  %v492_v59 = vmul.f32 %v1531_v56, %v1531_v56  ;;  %v1539_v60 = vpop.f32.mrb[7].mxu0 }
 0x11b   :  { %v1122_v0 = vpack.c.bf16 %v1539_v60, %v1529_v55  ;;  %v493_v1 = vmul.f32 %v1539_v60, %v1539_v60 }
 0x11c   :  { %v1132_v2 = vpack.c.bf16 %v492_v59, %v490_v57  ;;  %v580_v57 = vld [vmem:[%s1731_s2 + $0x78] sm:$0xff]  ;;  %v668_v59 = vld [vmem:[%s1732_s3 + $0x8] sm:$0xff] }
 0x11d   :  { %1123 = vmatprep.subr.bf16.mxu0 %v1122_v0  ;;  %v1130_v4 = vpack.c.bf16 %v493_v1, %v491_v63  ;;  %v1166_v62 = vpack.c.bf16 %v670_v61, %v668_v59 }
 0x11e   :  { %1125 = vmatpush1.bf16.msra.mxu0 %v1124_v58  ;;  %v1164_v58 = vpack.c.bf16 %v580_v57, %v579_v54 }
 0x11f   :  { %1131 = vmatprep.subr.bf16.mxu1 %v1130_v4  ;;  %1203 = vmatprep.subr.bf16.mxu0 %v1166_v62  ;;  %v667_v4 = vld [vmem:[%s1732_s3] sm:$0xff] }
 0x120   :  { %1133 = vmatpush1.bf16.msra.mxu1 %v1132_v2  ;;  %v1168_v7 = vpack.c.bf16 %v669_v6, %v667_v4 }
 0x121   :  { %996 = vmatmul.mubr.msk.f32.vlgmr.msra.gmra.mrb[8].mxu0 %vm411_vm3, %v1229_v11  ;;  %1135 = vmatprep.subr.bf16.mxu1 %v1553_v5 }
 0x122   :  { %883 = vmatprep.mubr.f32.mxu0 %v1228_v3  ;;  %1205 = vmatpush1.bf16.msra.mxu0 %v1168_v7 }
 0x123   :  { %997 = vmatmul.mubr.msk.f32.vlgmr.msra.gmra.mrb[0].mxu1 %vm411_vm3, %v1229_v11 }
 0x124   :  { %1137 = vmatpush3.bf16.msra.mxu1 %v1567_v10 }
 0x125   :  { %1139 = vmatprep.subr.bf16.mxu1 %v1570_v12 }
 0x128   :  { %1141 = vmatpush3.bf16.msra.mxu1 %v1586_v17 }
 0x129   :  { %1143 = vmatprep.subr.bf16.mxu1 %v1589_v18 }
 0x12c   :  { %1145 = vmatpush3.bf16.msra.mxu1 %v1604_v23 }
 0x12d   :  { %1147 = vmatprep.subr.bf16.mxu1 %v1607_v26 }
 0x130   :  { %1149 = vmatpush3.bf16.msra.mxu1 %v1622_v31 }
 0x131   :  { %1151 = vmatprep.subr.bf16.mxu1 %v1150_v32 }
 0x134   :  { %1153 = vmatpush3.bf16.msra.mxu1 %v1152_v25 }
 0x135   :  { %1155 = vmatprep.subr.bf16.mxu1 %v1154_v37 }
 0x138   :  { %1157 = vmatpush3.bf16.msra.mxu1 %v1156_v34 }
 0x139   :  { %1159 = vmatprep.subr.bf16.mxu1 %v1158_v45 }
 0x13c   :  { %1161 = vmatpush3.bf16.msra.mxu1 %v1160_v51 }
 0x13d   :  { %1163 = vmatprep.subr.bf16.mxu1 %v1162_v52 }
 0x140   :  { %1165 = vmatpush3.bf16.msra.mxu1 %v1164_v58 }
 0x141   :  { %1167 = vmatprep.subr.bf16.mxu1 %v1166_v62 }
 0x1f4   :  { %v481_v63 = vpop.f32.mrb[8].mxu0 }
 0x1f5   :  { %v483_v0 = vpop.f32.mrb[9].mxu0 }
 0x1f6   :  { %661 = vmatprep.mubr.f32.mxu1 %v483_v0  ;;  %v560_v1 = vpop.f32.mrb[0].mxu1 }
 0x1f7   :  { %662 = vmatmul.mubr.f32.vlgmr.msra.gmra.mrb[2].mxu1 %v481_v63  ;;  %v562_v2 = vpop.f32.mrb[1].mxu1 }
 0x1f8   :  { %739 = vmatprep.mubr.f32.mxu1 %v1228_v3  ;;  %1169 = vmatpush1.bf16.msra.mxu1 %v1168_v7  ;;  %v900_v3 = vlaneseq }
 0x1f9   :  { %1171 = vmatprep.subr.bf16.mxu1 %v1553_v5 }
 0x1fa   :  { %v901_v5 = vshrl.u32 %v900_v3, 7 }
 0x2ca   :  { %v1032_v8 = vpop.f32.mrb[2].mxu1 }
 0x2cb   :  { %v1033_v9 = vpop.f32.mrb[3].mxu1 }
 0x2cc   :  { %v1034_v11 = vadd.f32 %v1033_v9, %v1032_v8 }
 0x2ce   :  { %998 = vmatmul.mubr.msk.f32.vlgmr.msra.gmra.mrb[4].mxu1 %vm671_vm4, %v1034_v11 }
 0x2cf   :  { %1173 = vmatpush3.bf16.msra.mxu1 %v1567_v10  ;;  %810 = vmatprep.mubr.f32.mxu1 %v562_v2  ;;  %v902_v10 = vsub.s32 0, %v901_v5 }
 0x2d0   :  { %1175 = vmatprep.subr.bf16.mxu1 %v1570_v12 }
 0x2d1   :  { %v949_v38 = vrot.slane %v944_v35, %v902_v10 }
 0x2d3   :  { %1177 = vmatpush3.bf16.msra.mxu1 %v1586_v17 }
 0x2d4   :  { %1179 = vmatprep.subr.bf16.mxu1 %v1589_v18 }
 0x2d7   :  { %1181 = vmatpush3.bf16.msra.mxu1 %v1604_v23 }
 0x2d8   :  { %1183 = vmatprep.subr.bf16.mxu1 %v1607_v26 }
 0x2db   :  { %1185 = vmatpush3.bf16.msra.mxu1 %v1622_v31 }
 0x2dc   :  { %1187 = vmatprep.subr.bf16.mxu1 %v1150_v32 }
 0x2df   :  { %1189 = vmatpush3.bf16.msra.mxu1 %v1152_v25 }
 0x2e0   :  { %1191 = vmatprep.subr.bf16.mxu1 %v1154_v37 }
 0x2e3   :  { %1193 = vmatpush3.bf16.msra.mxu1 %v1156_v34 }
 0x2e4   :  { %1195 = vmatprep.subr.bf16.mxu1 %v1158_v45 }
 0x2e7   :  { %1197 = vmatpush3.bf16.msra.mxu1 %v1160_v51 }
 0x2e8   :  { %1199 = vmatprep.subr.bf16.mxu1 %v1162_v52 }
 0x2eb   :  { %1201 = vmatpush3.bf16.msra.mxu1 %v1164_v58 }
 0x2ee   :  { %811 = vmatmul.mubr.f32.vlgmr.msra.gmra.mrb[6].mxu1 %v560_v1 }
 0x3a1   :  { %v741_v12 = vpop.f32.mrb[4].mxu1 }
 0x3a2   :  { %v915_v13 = vrot.slane %v741_v12, %v902_v10  ;;  %v743_v14 = vpop.f32.mrb[5].mxu1 }
 0x3a3   :  { %v919_v15 = vrot.slane %v743_v14, %v902_v10  ;;  %v891_v29 = vmul.f32 %v743_v14, %v743_v14 }
 0x3a4   :  { %v920_v16 = vsub.f32 %v1507_v42, %v915_v13  ;;  %v922_v17 = vsub.f32 %v1511_v44, %v915_v13  ;;  %v924_v18 = vsub.f32 %v1527_v53, %v915_v13  ;;  %v926_v19 = vsub.f32 %v1531_v56, %v915_v13 }
 0x3a5   :  { %v921_v20 = vsub.f32 %v1509_v43, %v919_v15  ;;  %v923_v21 = vsub.f32 %v1515_v46, %v919_v15  ;;  %v925_v22 = vsub.f32 %v1529_v55, %v919_v15  ;;  %v927_v23 = vsub.f32 %v1539_v60, %v919_v15  ;;  %v898_v43 = vld [vmem:[%s1733_s4] sm:$0x3] }
 0x3a6   :  { %v890_v42 = vmul.f32 %v741_v12, %v741_v12  ;;  %v906_v46 = vsub.s32 1, %v901_v5  ;;  %v903_v55 = vrot.slane %v898_v43, %v902_v10 }
 0x3a8   :  { %v907_v60 = vrot.slane %v898_v43, %v906_v46  ;;  %v953_v40 = vrot.slane %v944_v35, %v906_v46 }
 0x3c1   :  { %v1067_v26 = vpop.f32.mrb[6].mxu1 }
 0x3c2   :  { %v1068_v27 = vpop.f32.mrb[7].mxu1 }
 0x3c3   :  { %v1069_v28 = vadd.f32 %v1068_v27, %v1067_v26 }
 0x3c5   :  { %999 = vmatmul.mubr.msk.f32.vlgmr.msra.gmra.mrb[10].mxu0 %vm671_vm4, %v1069_v28 }
 0x498   :  { %v885_v44 = vpop.f32.mrb[10].mxu0 }
 0x499   :  { %v892_v30 = vsub.f32 %v885_v44, %v890_v42  ;;  %v887_v53 = vpop.f32.mrb[11].mxu0 }
 0x49a   :  { %v893_v31 = vsub.f32 %v887_v53, %v891_v29 }
 0x49b   :  { %v894_v56 = vadd.f32 1e-05, %v892_v30 }
 0x49c   :  { %v895_v32 = vadd.f32 1e-05, %v893_v31 }
 0x49d   :  { %1224 = vrsqrt.f32 %v894_v56 }
 0x49e   :  { %1226 = vrsqrt.f32 %v895_v32 }
 0x4a7   :  { %v1225_v33 = vpop.eup %1224 }
 0x4a8   :  { %v1227_v36 = vpop.eup %1226  ;;  %v910_v24 = vmul.f32 %v1225_v33, %v903_v55 }
 0x4a9   :  { %v911_v25 = vmul.f32 %v1227_v36, %v907_v60 }
 0x4aa   :  { %v931_v37 = vrot.slane %v910_v24, %v902_v10 }
 0x4ab   :  { %v935_v39 = vrot.slane %v911_v25, %v902_v10 }
 0x4ac   :  { %v936_v41 = vmul.f32 %v931_v37, %v920_v16  ;;  %v938_v34 = vmul.f32 %v931_v37, %v922_v17  ;;  %v940_v45 = vmul.f32 %v931_v37, %v924_v18  ;;  %v942_v47 = vmul.f32 %v931_v37, %v926_v19 }
 0x4ad   :  { %v937_v48 = vmul.f32 %v935_v39, %v921_v20  ;;  %v939_v49 = vmul.f32 %v935_v39, %v923_v21  ;;  %v941_v50 = vmul.f32 %v935_v39, %v925_v22  ;;  %v943_v51 = vmul.f32 %v935_v39, %v927_v23 }
 0x4ae   :  { %v956_v52 = vadd.f32 %v949_v38, %v936_v41  ;;  %v958_v54 = vadd.f32 %v949_v38, %v938_v34  ;;  %v960_v57 = vadd.f32 %v949_v38, %v940_v45  ;;  %v962_v58 = vadd.f32 %v949_v38, %v942_v47 }
 0x4af   :  { %v957_v59 = vadd.f32 %v953_v40, %v937_v48  ;;  %v959_v61 = vadd.f32 %v953_v40, %v939_v49  ;;  %v961_v62 = vadd.f32 %v953_v40, %v941_v50  ;;  %v963_v63 = vadd.f32 %v953_v40, %v943_v51 }
 0x4b0   :  { %v964_v0 = vmax.f32 %v956_v52, 0.0  ;;  %v966_v1 = vmax.f32 %v958_v54, 0.0  ;;  %v968_v2 = vmax.f32 %v960_v57, 0.0  ;;  %v970_v4 = vmax.f32 %v962_v58, 0.0 }
 0x4b1   :  { %v965_v6 = vmax.f32 %v957_v59, 0.0  ;;  %v967_v7 = vmax.f32 %v959_v61, 0.0  ;;  %v969_v8 = vmax.f32 %v961_v62, 0.0  ;;  %v971_v9 = vmax.f32 %v963_v63, 0.0 }
 0x4b2   :  { %972 = vst [vmem:[%s1735_s6] sm:$0xff] %v964_v0  ;;  %974 = vst [vmem:[%s1735_s6 + $0x10] sm:$0xff] %v966_v1 }
 0x4b3   :  { %976 = vst [vmem:[%s1735_s6 + $0x20] sm:$0xff] %v968_v2  ;;  %978 = vst [vmem:[%s1735_s6 + $0x30] sm:$0xff] %v970_v4 }
 0x4b4   :  { %973 = vst [vmem:[%s1735_s6 + $0x8] sm:$0xff] %v965_v6  ;;  %975 = vst [vmem:[%s1735_s6 + $0x18] sm:$0xff] %v967_v7 }
 0x4b5   :  { %977 = vst [vmem:[%s1735_s6 + $0x28] sm:$0xff] %v969_v8  ;;  %979 = vst [vmem:[%s1735_s6 + $0x38] sm:$0xff] %v971_v9 }

</bundles_post_ra>
